<compile_context>
chip_gen: v6e
topology: v6e:2x2x1
jax: 0.10.0
libtpu: 0.0.40
codegen_flags: <defaults>
</compile_context>

<pallas_src>
import functools
import math

import jax
import jax.numpy as jnp
from jax import lax
from jax.experimental import pallas as pl
from jax.experimental.pallas import tpu as pltpu


# ----------------------------------------------------------------------------
# Tiled matmul + bias kernel (used for the QKV and output projections).
# ----------------------------------------------------------------------------
def _matmul_bias_kernel(x_ref, w_ref, b_ref, o_ref, acc_ref):
    # x_ref: (tm, tk) bf16, w_ref: (tk, tn) bf16, b_ref: (1, tn) f32.
    @pl.when(pl.program_id(2) == 0)
    def _():
        acc_ref[...] = jnp.zeros_like(acc_ref)

    acc_ref[...] += jnp.dot(x_ref[...], w_ref[...],
                            preferred_element_type=jnp.float32)

    @pl.when(pl.program_id(2) == pl.num_programs(2) - 1)
    def _():
        o_ref[...] = (acc_ref[...] + b_ref[...]).astype(o_ref.dtype)


def _pick_tile(dim, prefs=(256, 128)):
    for p in prefs:
        if dim >= p and dim % p == 0:
            return p
    return dim  # fall back to the full (untiled) dimension


def _linear(x2d, w_bf16, b_row, out_dtype):
    """x2d: (M, K) any float; w_bf16: (K, N) bf16; b_row: (1, N) f32 -> (M, N)."""
    M, K = x2d.shape
    _, N = w_bf16.shape
    tm, tn, tk = _pick_tile(M), _pick_tile(N), _pick_tile(K)
    grid = (M // tm, N // tn, K // tk)

    return pl.pallas_call(
        _matmul_bias_kernel,
        out_shape=jax.ShapeDtypeStruct((M, N), out_dtype),
        grid_spec=pltpu.PrefetchScalarGridSpec(
            num_scalar_prefetch=0,
            grid=grid,
            in_specs=[
                pl.BlockSpec((tm, tk), lambda i, j, k: (i, k)),
                pl.BlockSpec((tk, tn), lambda i, j, k: (k, j)),
                pl.BlockSpec((1, tn), lambda i, j, k: (0, j)),
            ],
            out_specs=pl.BlockSpec((tm, tn), lambda i, j, k: (i, j)),
            scratch_shapes=[pltpu.VMEM((tm, tn), jnp.float32)],
        ),
        compiler_params=pltpu.CompilerParams(
            dimension_semantics=("parallel", "parallel", "arbitrary")),
    )(x2d.astype(jnp.bfloat16), w_bf16, b_row)


# ----------------------------------------------------------------------------
# Flash-attention kernel: grid = (B, H, num_q_blocks), online softmax over an
# in-kernel KV loop bounded by the causal structure (kv_block <= q_block).
# ----------------------------------------------------------------------------
def _flash_attn_kernel(q_ref, k_ref, v_ref, o_ref, *, scale, block_k):
    # q_ref: (1, 1, tq, D) bf16; k_ref/v_ref: (1, 1, T, D) bf16.
    tq, D = q_ref.shape[2], q_ref.shape[3]
    tk = block_k
    qi = pl.program_id(2)

    # Fold 1/sqrt(D) into q (tq*D multiplies instead of scaling the TxT scores).
    q = q_ref[0, 0, :, :] * scale                                    # bf16 (tq, D)
    row = lax.broadcasted_iota(jnp.int32, (tq, tk), 0) + qi * tq     # global q pos

    def body(kv, carry):
        m_prev, l_prev, acc_prev = carry
        start = pl.multiple_of(kv * tk, tk)
        k_t = k_ref[0, 0, pl.ds(start, tk), :]                       # (tk, D) bf16
        v_t = v_ref[0, 0, pl.ds(start, tk), :]                       # (tk, D) bf16

        # q @ k^T on the MXU with f32 accumulation (no explicit transpose).
        s = lax.dot_general(q, k_t, (((1,), (1,)), ((), ())),
                            preferred_element_type=jnp.float32)      # (tq, tk)

        # Causal mask with a large finite negative (NaN-safe). Only the
        # diagonal block is actually affected; upper-triangle blocks are never
        # visited because the loop is bounded at qi + 1.
        col = lax.broadcasted_iota(jnp.int32, (tq, tk), 1) + kv * tk
        s = jnp.where(row >= col, s, -1e30)

        # Online softmax update.
        m_new = jnp.maximum(m_prev, jnp.max(s, axis=-1, keepdims=True))
        alpha = jnp.exp(m_prev - m_new)
        p = jnp.exp(s - m_new)
        l_new = alpha * l_prev + jnp.sum(p, axis=-1, keepdims=True)
        acc_new = alpha * acc_prev + jnp.dot(p.astype(jnp.bfloat16), v_t,
                                             preferred_element_type=jnp.float32)
        return m_new, l_new, acc_new

    m0 = jnp.full((tq, 1), -1e30, dtype=jnp.float32)
    l0 = jnp.zeros((tq, 1), dtype=jnp.float32)
    a0 = jnp.zeros((tq, D), dtype=jnp.float32)
    # Causal block skipping: only kv blocks 0..qi are processed.
    _, l, acc = lax.fori_loop(0, qi + 1, body, (m0, l0, a0))

    # Normalize once on the (tq, D) output; reciprocal goes to the EUP slot.
    o_ref[0, 0, :, :] = (acc * pl.reciprocal(l, approx=True)).astype(o_ref.dtype)


def _flash_attention(q, k, v):
    """q, k, v: (B, H, T, D) bf16 -> (B, H, T, D) f32."""
    B, H, T, D = q.shape
    tq = _pick_tile(T)            # query/key block size (same tile for both)
    nq = T // tq
    scale = 1.0 / math.sqrt(D)
    kernel = functools.partial(_flash_attn_kernel, scale=scale, block_k=tq)

    return pl.pallas_call(
        kernel,
        out_shape=jax.ShapeDtypeStruct((B, H, T, D), jnp.float32),
        grid_spec=pltpu.PrefetchScalarGridSpec(
            num_scalar_prefetch=0,
            grid=(B, H, nq),
            in_specs=[
                pl.BlockSpec((1, 1, tq, D), lambda b, h, i: (b, h, i, 0)),
                # K/V index maps are constant along the q-block axis, so each
                # head's K/V is DMA'd once per (b, h).
                pl.BlockSpec((1, 1, T, D), lambda b, h, i: (b, h, 0, 0)),
                pl.BlockSpec((1, 1, T, D), lambda b, h, i: (b, h, 0, 0)),
            ],
            out_specs=pl.BlockSpec((1, 1, tq, D), lambda b, h, i: (b, h, i, 0)),
        ),
        compiler_params=pltpu.CompilerParams(
            # batch x head x query-block parallelism keeps both v7x TCs busy.
            dimension_semantics=("parallel", "parallel", "parallel")),
    )(q, k, v)


# ----------------------------------------------------------------------------
# Full forward pass (matches CausalSelfAttention.forward in eval mode).
# ----------------------------------------------------------------------------
def causal_self_attention(x, w_qkv, b_qkv, w_proj, b_proj, *, n_head):
    """x: (B, T, C); w_qkv: (C, 3C); w_proj: (C, C); biases: (3C,), (C,)."""
    B, T, C = x.shape
    H = n_head
    D = C // H

    w_qkv_bf = w_qkv.astype(jnp.bfloat16)
    w_proj_bf = w_proj.astype(jnp.bfloat16)
    b_qkv_row = b_qkv.reshape(1, 3 * C).astype(jnp.float32)
    b_proj_row = b_proj.reshape(1, C).astype(jnp.float32)

    # 1) Fused QKV projection (LoRA already folded into w_qkv).
    qkv = _linear(x.reshape(B * T, C), w_qkv_bf, b_qkv_row, jnp.float32)

    # 2) Head split (XLA layout plumbing) -> lane-contiguous (T, D) per head.
    qkv = qkv.reshape(B, T, 3, H, D).transpose(2, 0, 3, 1, 4)   # (3, B, H, T, D)
    q = qkv[0].astype(jnp.bfloat16)
    k = qkv[1].astype(jnp.bfloat16)
    v = qkv[2].astype(jnp.bfloat16)

    y = _flash_attention(q, k, v)                               # (B, H, T, D) f32

    # 3) Merge heads and apply the output projection (LoRA folded).
    y2d = y.transpose(0, 2, 1, 3).reshape(B * T, C)
    out = _linear(y2d, w_proj_bf, b_proj_row, x.dtype)
    # TODO(synk): attn/resid dropout are identity here (eval mode / dropout_p=0).
    return out.reshape(B, T, C)


# ----------------------------------------------------------------------------
# Pure-JAX f32 reference for the correctness check.
# ----------------------------------------------------------------------------
def _reference(x, w_qkv, b_qkv, w_proj, b_proj, n_head):
    B, T, C = x.shape
    D = C // n_head
    qkv = x @ w_qkv + b_qkv
    q, k, v = jnp.split(qkv, 3, axis=-1)
    q = q.reshape(B, T, n_head, D).transpose(0, 2, 1, 3)
    k = k.reshape(B, T, n_head, D).transpose(0, 2, 1, 3)
    v = v.reshape(B, T, n_head, D).transpose(0, 2, 1, 3)
    att = jnp.einsum('bhtd,bhsd->bhts', q, k) / math.sqrt(D)
    mask = jnp.tril(jnp.ones((T, T), dtype=bool))
    att = jnp.where(mask[None, None], att, -jnp.inf)
    att = jax.nn.softmax(att, axis=-1)
    y = jnp.einsum('bhts,bhsd->bhtd', att, v)
    y = y.transpose(0, 2, 1, 3).reshape(B, T, C)
    return y @ w_proj + b_proj


if __name__ == "__main__":
    # Small config consistent with the module.
    B, T = 2, 8
    n_embd, n_head, lora_rank = 32, 4, 4

    key = jax.random.PRNGKey(0)
    kx, kw1, kb1, kw2, kb2, ka1, ka2 = jax.random.split(key, 7)

    x = jax.random.normal(kx, (B, T, n_embd), dtype=jnp.float32)

    # nn.Linear parameters (deterministic synthetic init), stored (out, in).
    W_attn = jax.random.normal(kw1, (3 * n_embd, n_embd), jnp.float32) * 0.02
    b_attn = jax.random.normal(kb1, (3 * n_embd,), jnp.float32) * 0.02
    W_proj = jax.random.normal(kw2, (n_embd, n_embd), jnp.float32) * 0.02
    b_proj = jax.random.normal(kb2, (n_embd,), jnp.float32) * 0.02

    # LoRA parameters (B matrices initialized to zero, as in the module).
    A_attn = jax.random.normal(ka1, (n_embd, lora_rank), jnp.float32) / math.sqrt(lora_rank)
    B_attn = jnp.zeros((lora_rank, 3 * n_embd), jnp.float32)
    A_proj = jax.random.normal(ka2, (n_embd, lora_rank), jnp.float32) / math.sqrt(lora_rank)
    B_proj = jnp.zeros((lora_rank, n_embd), jnp.float32)

    # Fold LoRA into the dense weights (exact: x @ W^T + x @ A @ B = x @ (W^T + A@B)).
    w_qkv_eff = W_attn.T + A_attn @ B_attn          # (C, 3C)
    w_proj_eff = W_proj.T + A_proj @ B_proj         # (C, C)

    fwd = jax.jit(functools.partial(causal_self_attention, n_head=n_head))
    y = fwd(x, w_qkv_eff, b_attn, w_proj_eff, b_proj)
    y = jax.block_until_ready(y)

    y_ref = _reference(x, w_qkv_eff, b_attn, w_proj_eff, b_proj, n_head)
    # Tolerance accounts for bf16 MXU inputs and the approximate reciprocal.
    assert jnp.allclose(y, y_ref, rtol=2e-2, atol=2e-2), "mismatch vs reference"

    print("KERNEL_OK")
</pallas_src>

<mosaic_0001>
module attributes {stable_mosaic.version = 11 : i64} {
  func.func @_matmul_bias_kernel(%arg0: i32, %arg1: i32, %arg2: i32, %arg3: memref<16x32xbf16, #tpu.memory_space<vmem>>, %arg4: memref<32x96xbf16, #tpu.memory_space<vmem>>, %arg5: memref<1x96xf32, #tpu.memory_space<vmem>>, %arg6: memref<16x96xf32, #tpu.memory_space<vmem>>, %arg7: memref<16x96xf32, #tpu.memory_space<vmem>>) attributes {dimension_semantics = [#tpu.dimension_semantics<parallel>, #tpu.dimension_semantics<parallel>, #tpu.dimension_semantics<arbitrary>], iteration_bounds = array<i64: 1, 1, 1>, scalar_prefetch = 0 : i64, scratch_operands = 1 : i64, tpu.core_type = #tpu.core_type<tc>, window_params = [{transform_indices = @transform_0, window_bounds = array<i64: 16, 32>}, {transform_indices = @transform_1, window_bounds = array<i64: 32, 96>}, {transform_indices = @transform_2, window_bounds = array<i64: 1, 96>}, {transform_indices = @transform_3, window_bounds = array<i64: 16, 96>}]} {
    %c0_i32 = arith.constant 0 : i32
    %0 = arith.cmpi eq, %arg2, %c0_i32 : i32
    %1 = arith.extui %0 : i1 to i32
    %c0_i32_0 = arith.constant 0 : i32
    %2 = arith.cmpi ne, %1, %c0_i32_0 : i32
    scf.if %2 {
      %cst_10 = arith.constant 0.000000e+00 : f32
      %12 = vector.broadcast %cst_10 : f32 to vector<16x96xf32>
      %c0_11 = arith.constant 0 : index
      %c0_12 = arith.constant 0 : index
      %13 = vector.load %arg7[%c0_11, %c0_12] : memref<16x96xf32, #tpu.memory_space<vmem>>, vector<16x96xf32>
      tpu.vector_store %arg7[%c0_11, %c0_12], %12 {strides = array<i32>} : memref<16x96xf32, #tpu.memory_space<vmem>>, vector<16x96xf32>,
    } else {
    }
    %c0 = arith.constant 0 : index
    %c0_1 = arith.constant 0 : index
    %3 = vector.load %arg7[%c0, %c0_1] : memref<16x96xf32, #tpu.memory_space<vmem>>, vector<16x96xf32>
    %c0_2 = arith.constant 0 : index
    %c0_3 = arith.constant 0 : index
    %4 = vector.load %arg3[%c0_2, %c0_3] : memref<16x32xbf16, #tpu.memory_space<vmem>>, vector<16x32xbf16>
    %c0_4 = arith.constant 0 : index
    %c0_5 = arith.constant 0 : index
    %5 = vector.load %arg4[%c0_4, %c0_5] : memref<32x96xbf16, #tpu.memory_space<vmem>>, vector<32x96xbf16>
    %cst = arith.constant dense<0.000000e+00> : vector<16x96xf32>
    %6 = tpu.matmul %4, %5, %cst {dimension_numbers = #tpu.dot_dimension_numbers<[1], [0], [0], [1], [0, 0, 1, 1], [], []>} : vector<16x32xbf16>, vector<32x96xbf16>, vector<16x96xf32> -> vector<16x96xf32>
    %7 = arith.addf %3, %6 : vector<16x96xf32>
    %c0_6 = arith.constant 0 : index
    %c0_7 = arith.constant 0 : index
    %8 = vector.load %arg7[%c0_6, %c0_7] : memref<16x96xf32, #tpu.memory_space<vmem>>, vector<16x96xf32>
    tpu.vector_store %arg7[%c0_6, %c0_7], %7 {strides = array<i32>} : memref<16x96xf32, #tpu.memory_space<vmem>>, vector<16x96xf32>,
    %c0_i32_8 = arith.constant 0 : i32
    %9 = arith.cmpi eq, %arg2, %c0_i32_8 : i32
    %10 = arith.extui %9 : i1 to i32
    %c0_i32_9 = arith.constant 0 : i32
    %11 = arith.cmpi ne, %10, %c0_i32_9 : i32
    scf.if %11 {
      %c0_10 = arith.constant 0 : index
      %c0_11 = arith.constant 0 : index
      %12 = vector.load %arg7[%c0_10, %c0_11] : memref<16x96xf32, #tpu.memory_space<vmem>>, vector<16x96xf32>
      %c0_12 = arith.constant 0 : index
      %c0_13 = arith.constant 0 : index
      %13 = vector.load %arg5[%c0_12, %c0_13] : memref<1x96xf32, #tpu.memory_space<vmem>>, vector<1x96xf32>
      %14 = vector.broadcast %13 : vector<1x96xf32> to vector<16x96xf32>
      %15 = arith.addf %12, %14 : vector<16x96xf32>
      %c0_14 = arith.constant 0 : index
      %c0_15 = arith.constant 0 : index
      %16 = vector.load %arg6[%c0_14, %c0_15] : memref<16x96xf32, #tpu.memory_space<vmem>>, vector<16x96xf32>
      tpu.vector_store %arg6[%c0_14, %c0_15], %15 {strides = array<i32>} : memref<16x96xf32, #tpu.memory_space<vmem>>, vector<16x96xf32>,
    } else {
    }
    return
  }
  func.func @transform_0(%arg0: i32, %arg1: i32, %arg2: i32) -> (i32, i32) {
    %c0_i32 = arith.constant 0 : i32
    return %arg0, %arg2 : i32, i32
  }
  func.func @transform_1(%arg0: i32, %arg1: i32, %arg2: i32) -> (i32, i32) {
    %c0_i32 = arith.constant 0 : i32
    return %arg2, %arg1 : i32, i32
  }
  func.func @transform_2(%arg0: i32, %arg1: i32, %arg2: i32) -> (i32, i32) {
    %c0_i32 = arith.constant 0 : i32
    %c0_i32_0 = arith.constant 0 : i32
    return %c0_i32, %arg1 : i32, i32
  }
  func.func @transform_3(%arg0: i32, %arg1: i32, %arg2: i32) -> (i32, i32) {
    %c0_i32 = arith.constant 0 : i32
    return %arg0, %arg1 : i32, i32
  }
}

module attributes {stable_mosaic.version = 11 : i64} {
  func.func @_flash_attn_kernel(%arg0: i32, %arg1: i32, %arg2: i32, %arg3: memref<1x1x8x8xbf16, #tpu.memory_space<vmem>>, %arg4: memref<1x1x8x8xbf16, #tpu.memory_space<vmem>>, %arg5: memref<1x1x8x8xbf16, #tpu.memory_space<vmem>>, %arg6: memref<1x1x8x8xf32, #tpu.memory_space<vmem>>) attributes {dimension_semantics = [#tpu.dimension_semantics<parallel>, #tpu.dimension_semantics<parallel>, #tpu.dimension_semantics<parallel>], iteration_bounds = array<i64: 2, 4, 1>, scalar_prefetch = 0 : i64, scratch_operands = 0 : i64, tpu.core_type = #tpu.core_type<tc>, window_params = [{transform_indices = @transform_0, window_bounds = array<i64: 1, 1, 8, 8>}, {transform_indices = @transform_1, window_bounds = array<i64: 1, 1, 8, 8>}, {transform_indices = @transform_2, window_bounds = array<i64: 1, 1, 8, 8>}, {transform_indices = @transform_3, window_bounds = array<i64: 1, 1, 8, 8>}]} {
    %c0 = arith.constant 0 : index
    %c0_0 = arith.constant 0 : index
    %c0_1 = arith.constant 0 : index
    %c0_2 = arith.constant 0 : index
    %0 = vector.load %arg3[%c0, %c0_0, %c0_1, %c0_2] : memref<1x1x8x8xbf16, #tpu.memory_space<vmem>>, vector<1x1x8x8xbf16>
    %1 = vector.shape_cast %0 : vector<1x1x8x8xbf16> to vector<8x8xbf16>
    %cst = arith.constant 3.535160e-01 : bf16
    %2 = vector.broadcast %cst : bf16 to vector<8x8xbf16>
    %3 = arith.mulf %1, %2 : vector<8x8xbf16>
    %4 = tpu.iota {dimensions = array<i32: 0>} : vector<8x8xi32>
    %c8_i32 = arith.constant 8 : i32
    %5 = arith.muli %arg2, %c8_i32 : i32
    %6 = vector.broadcast %5 : i32 to vector<8x8xi32>
    %7 = arith.addi %4, %6 : vector<8x8xi32>
    %cst_3 = arith.constant -1.000000e+30 : f32
    %8 = vector.broadcast %cst_3 : f32 to vector<8x1xf32>
    %cst_4 = arith.constant 0.000000e+00 : f32
    %9 = vector.broadcast %cst_4 : f32 to vector<8x1xf32>
    %cst_5 = arith.constant 0.000000e+00 : f32
    %10 = vector.broadcast %cst_5 : f32 to vector<8x8xf32>
    %c1_i32 = arith.constant 1 : i32
    %11 = arith.addi %arg2, %c1_i32 : i32
    %c0_i32 = arith.constant 0 : i32
    %12 = arith.subi %11, %c0_i32 : i32
    %13 = arith.addi %c0_i32, %12 : i32
    %c1_i32_6 = arith.constant 1 : i32
    %14:3 = scf.for %arg7 = %c0_i32 to %13 step %c1_i32_6 iter_args(%arg8 = %8, %arg9 = %9, %arg10 = %10) -> (vector<8x1xf32>, vector<8x1xf32>, vector<8x8xf32>)  : i32 {
      %c8_i32_11 = arith.constant 8 : i32
      %21 = arith.muli %arg7, %c8_i32_11 : i32
      %22 = tpu.assume_multiple %21, 8 : i32
      %c0_12 = arith.constant 0 : index
      %c0_13 = arith.constant 0 : index
      %23 = arith.index_cast %22 : i32 to index
      %c0_14 = arith.constant 0 : index
      %24 = vector.load %arg4[%c0_12, %c0_13, %23, %c0_14] : memref<1x1x8x8xbf16, #tpu.memory_space<vmem>>, vector<1x1x8x8xbf16>
      %25 = vector.shape_cast %24 : vector<1x1x8x8xbf16> to vector<8x8xbf16>
      %c0_15 = arith.constant 0 : index
      %c0_16 = arith.constant 0 : index
      %26 = arith.index_cast %22 : i32 to index
      %c0_17 = arith.constant 0 : index
      %27 = vector.load %arg5[%c0_15, %c0_16, %26, %c0_17] : memref<1x1x8x8xbf16, #tpu.memory_space<vmem>>, vector<1x1x8x8xbf16>
      %28 = vector.shape_cast %27 : vector<1x1x8x8xbf16> to vector<8x8xbf16>
      %cst_18 = arith.constant dense<0.000000e+00> : vector<8x8xf32>
      %29 = tpu.matmul %3, %25, %cst_18 {dimension_numbers = #tpu.dot_dimension_numbers<[1], [1], [0], [0], [0, 0, 1, 0], [], []>} : vector<8x8xbf16>, vector<8x8xbf16>, vector<8x8xf32> -> vector<8x8xf32>
      %30 = tpu.iota {dimensions = array<i32: 1>} : vector<8x8xi32>
      %c8_i32_19 = arith.constant 8 : i32
      %31 = arith.muli %arg7, %c8_i32_19 : i32
      %32 = vector.broadcast %31 : i32 to vector<8x8xi32>
      %33 = arith.addi %30, %32 : vector<8x8xi32>
      %34 = arith.cmpi sge, %7, %33 : vector<8x8xi32>
      %cst_20 = arith.constant -1.000000e+30 : f32
      %35 = vector.broadcast %cst_20 : f32 to vector<8x8xf32>
      %36 = arith.select %34, %29, %35 : vector<8x8xi1>, vector<8x8xf32>
      %cst_21 = arith.constant dense<0xFF800000> : vector<8xf32>
      %37 = vector.multi_reduction <maximumf>, %36, %cst_21 [1] : vector<8x8xf32> to vector<8xf32>
      %38 = vector.shape_cast %37 : vector<8xf32> to vector<8x1xf32>
      %39 = arith.maximumf %arg8, %38 : vector<8x1xf32>
      %40 = arith.subf %arg8, %39 : vector<8x1xf32>
      %41 = math.exp %40 : vector<8x1xf32>
      %42 = vector.broadcast %39 : vector<8x1xf32> to vector<8x8xf32>
      %43 = arith.subf %36, %42 : vector<8x8xf32>
      %44 = math.exp %43 : vector<8x8xf32>
      %45 = arith.mulf %41, %arg9 : vector<8x1xf32>
      %cst_22 = arith.constant dense<0.000000e+00> : vector<8xf32>
      %46 = vector.multi_reduction <add>, %44, %cst_22 [1] : vector<8x8xf32> to vector<8xf32>
      %47 = vector.shape_cast %46 : vector<8xf32> to vector<8x1xf32>
      %48 = arith.addf %45, %47 : vector<8x1xf32>
      %49 = vector.broadcast %41 : vector<8x1xf32> to vector<8x8xf32>
      %50 = arith.mulf %49, %arg10 : vector<8x8xf32>
      %51 = arith.truncf %44 : vector<8x8xf32> to vector<8x8xbf16>
      %cst_23 = arith.constant dense<0.000000e+00> : vector<8x8xf32>
      %52 = tpu.matmul %51, %28, %cst_23 {dimension_numbers = #tpu.dot_dimension_numbers<[1], [0], [0], [1], [0, 0, 1, 1], [], []>} : vector<8x8xbf16>, vector<8x8xbf16>, vector<8x8xf32> -> vector<8x8xf32>
      %53 = arith.addf %50, %52 : vector<8x8xf32>
      scf.yield %39, %48, %53 : vector<8x1xf32>, vector<8x1xf32>, vector<8x8xf32>
    }
    %15 = tpu.reciprocal %14#1 {approx = true} : vector<8x1xf32> -> vector<8x1xf32>
    %16 = vector.broadcast %15 : vector<8x1xf32> to vector<8x8xf32>
    %17 = arith.mulf %14#2, %16 : vector<8x8xf32>
    %c0_7 = arith.constant 0 : index
    %c0_8 = arith.constant 0 : index
    %c0_9 = arith.constant 0 : index
    %c0_10 = arith.constant 0 : index
    %18 = vector.load %arg6[%c0_7, %c0_8, %c0_9, %c0_10] : memref<1x1x8x8xf32, #tpu.memory_space<vmem>>, vector<1x1x8x8xf32>
    %19 = vector.shape_cast %18 : vector<1x1x8x8xf32> to vector<8x8xf32>
    %20 = vector.shape_cast %17 : vector<8x8xf32> to vector<1x1x8x8xf32>
    tpu.vector_store %arg6[%c0_7, %c0_8, %c0_9, %c0_10], %20 {strides = array<i32>} : memref<1x1x8x8xf32, #tpu.memory_space<vmem>>, vector<1x1x8x8xf32>,
    return
  }
  func.func @transform_0(%arg0: i32, %arg1: i32, %arg2: i32) -> (i32, i32, i32, i32) {
    %c0_i32 = arith.constant 0 : i32
    %c0_i32_0 = arith.constant 0 : i32
    return %arg0, %arg1, %arg2, %c0_i32 : i32, i32, i32, i32
  }
  func.func @transform_1(%arg0: i32, %arg1: i32, %arg2: i32) -> (i32, i32, i32, i32) {
    %c0_i32 = arith.constant 0 : i32
    %c0_i32_0 = arith.constant 0 : i32
    %c0_i32_1 = arith.constant 0 : i32
    return %arg0, %arg1, %c0_i32, %c0_i32_0 : i32, i32, i32, i32
  }
  func.func @transform_2(%arg0: i32, %arg1: i32, %arg2: i32) -> (i32, i32, i32, i32) {
    %c0_i32 = arith.constant 0 : i32
    %c0_i32_0 = arith.constant 0 : i32
    %c0_i32_1 = arith.constant 0 : i32
    return %arg0, %arg1, %c0_i32, %c0_i32_0 : i32, i32, i32, i32
  }
  func.func @transform_3(%arg0: i32, %arg1: i32, %arg2: i32) -> (i32, i32, i32, i32) {
    %c0_i32 = arith.constant 0 : i32
    %c0_i32_0 = arith.constant 0 : i32
    return %arg0, %arg1, %arg2, %c0_i32 : i32, i32, i32, i32
  }
}

module attributes {stable_mosaic.version = 11 : i64} {
  func.func @_matmul_bias_kernel(%arg0: i32, %arg1: i32, %arg2: i32, %arg3: memref<16x32xbf16, #tpu.memory_space<vmem>>, %arg4: memref<32x32xbf16, #tpu.memory_space<vmem>>, %arg5: memref<1x32xf32, #tpu.memory_space<vmem>>, %arg6: memref<16x32xf32, #tpu.memory_space<vmem>>, %arg7: memref<16x32xf32, #tpu.memory_space<vmem>>) attributes {dimension_semantics = [#tpu.dimension_semantics<parallel>, #tpu.dimension_semantics<parallel>, #tpu.dimension_semantics<arbitrary>], iteration_bounds = array<i64: 1, 1, 1>, scalar_prefetch = 0 : i64, scratch_operands = 1 : i64, tpu.core_type = #tpu.core_type<tc>, window_params = [{transform_indices = @transform_0, window_bounds = array<i64: 16, 32>}, {transform_indices = @transform_1, window_bounds = array<i64: 32, 32>}, {transform_indices = @transform_2, window_bounds = array<i64: 1, 32>}, {transform_indices = @transform_3, window_bounds = array<i64: 16, 32>}]} {
    %c0_i32 = arith.constant 0 : i32
    %0 = arith.cmpi eq, %arg2, %c0_i32 : i32
    %1 = arith.extui %0 : i1 to i32
    %c0_i32_0 = arith.constant 0 : i32
    %2 = arith.cmpi ne, %1, %c0_i32_0 : i32
    scf.if %2 {
      %cst_10 = arith.constant 0.000000e+00 : f32
      %12 = vector.broadcast %cst_10 : f32 to vector<16x32xf32>
      %c0_11 = arith.constant 0 : index
      %c0_12 = arith.constant 0 : index
      %13 = vector.load %arg7[%c0_11, %c0_12] : memref<16x32xf32, #tpu.memory_space<vmem>>, vector<16x32xf32>
      tpu.vector_store %arg7[%c0_11, %c0_12], %12 {strides = array<i32>} : memref<16x32xf32, #tpu.memory_space<vmem>>, vector<16x32xf32>,
    } else {
    }
    %c0 = arith.constant 0 : index
    %c0_1 = arith.constant 0 : index
    %3 = vector.load %arg7[%c0, %c0_1] : memref<16x32xf32, #tpu.memory_space<vmem>>, vector<16x32xf32>
    %c0_2 = arith.constant 0 : index
    %c0_3 = arith.constant 0 : index
    %4 = vector.load %arg3[%c0_2, %c0_3] : memref<16x32xbf16, #tpu.memory_space<vmem>>, vector<16x32xbf16>
    %c0_4 = arith.constant 0 : index
    %c0_5 = arith.constant 0 : index
    %5 = vector.load %arg4[%c0_4, %c0_5] : memref<32x32xbf16, #tpu.memory_space<vmem>>, vector<32x32xbf16>
    %cst = arith.constant dense<0.000000e+00> : vector<16x32xf32>
    %6 = tpu.matmul %4, %5, %cst {dimension_numbers = #tpu.dot_dimension_numbers<[1], [0], [0], [1], [0, 0, 1, 1], [], []>} : vector<16x32xbf16>, vector<32x32xbf16>, vector<16x32xf32> -> vector<16x32xf32>
    %7 = arith.addf %3, %6 : vector<16x32xf32>
    %c0_6 = arith.constant 0 : index
    %c0_7 = arith.constant 0 : index
    %8 = vector.load %arg7[%c0_6, %c0_7] : memref<16x32xf32, #tpu.memory_space<vmem>>, vector<16x32xf32>
    tpu.vector_store %arg7[%c0_6, %c0_7], %7 {strides = array<i32>} : memref<16x32xf32, #tpu.memory_space<vmem>>, vector<16x32xf32>,
    %c0_i32_8 = arith.constant 0 : i32
    %9 = arith.cmpi eq, %arg2, %c0_i32_8 : i32
    %10 = arith.extui %9 : i1 to i32
    %c0_i32_9 = arith.constant 0 : i32
    %11 = arith.cmpi ne, %10, %c0_i32_9 : i32
    scf.if %11 {
      %c0_10 = arith.constant 0 : index
      %c0_11 = arith.constant 0 : index
      %12 = vector.load %arg7[%c0_10, %c0_11] : memref<16x32xf32, #tpu.memory_space<vmem>>, vector<16x32xf32>
      %c0_12 = arith.constant 0 : index
      %c0_13 = arith.constant 0 : index
      %13 = vector.load %arg5[%c0_12, %c0_13] : memref<1x32xf32, #tpu.memory_space<vmem>>, vector<1x32xf32>
      %14 = vector.broadcast %13 : vector<1x32xf32> to vector<16x32xf32>
      %15 = arith.addf %12, %14 : vector<16x32xf32>
      %c0_14 = arith.constant 0 : index
      %c0_15 = arith.constant 0 : index
      %16 = vector.load %arg6[%c0_14, %c0_15] : memref<16x32xf32, #tpu.memory_space<vmem>>, vector<16x32xf32>
      tpu.vector_store %arg6[%c0_14, %c0_15], %15 {strides = array<i32>} : memref<16x32xf32, #tpu.memory_space<vmem>>, vector<16x32xf32>,
    } else {
    }
    return
  }
  func.func @transform_0(%arg0: i32, %arg1: i32, %arg2: i32) -> (i32, i32) {
    %c0_i32 = arith.constant 0 : i32
    return %arg0, %arg2 : i32, i32
  }
  func.func @transform_1(%arg0: i32, %arg1: i32, %arg2: i32) -> (i32, i32) {
    %c0_i32 = arith.constant 0 : i32
    return %arg2, %arg1 : i32, i32
  }
  func.func @transform_2(%arg0: i32, %arg1: i32, %arg2: i32) -> (i32, i32) {
    %c0_i32 = arith.constant 0 : i32
    %c0_i32_0 = arith.constant 0 : i32
    return %c0_i32, %arg1 : i32, i32
  }
  func.func @transform_3(%arg0: i32, %arg1: i32, %arg2: i32) -> (i32, i32) {
    %c0_i32 = arith.constant 0 : i32
    return %arg0, %arg1 : i32, i32
  }
}

</mosaic_0001>

<bundles_post_ra>
// kernel: causal_self_attention.3
= control target key start
LH: loop header
LB: loop body
LE: loop exit
PB: predicated region body
PF: predicated region fallthrough
CT: control target
= control target key end

     0   :  { %vm19_vm0 = vcmask 785408   ;;  %v138_v0 = vmov 0.0   ;;  %vm139_vm1 = vmmov 0   ;;  %vm47_vm2 = vcmask 261120   ;;  %s184_s1 = inlined_call_operand.vmem [shape: bf16[32,96], index: 1, kind: input, shape index: {}]   ;;  %s185_s0 = inlined_call_operand.vmem [shape: bf16[16,32], index: 0, kind: input, shape index: {}]   ;;  %s186_s2 = inlined_call_operand.vmem [shape: f32[1,96], index: 2, kind: input, shape index: {}]   ;;  %s187_s3 = inlined_call_operand.vmem [shape: f32[16,96], index: 3, kind: output, shape index: {}]  }
   0x1   :  { %125 = vmatprep.subr.bf16.mxu0 %v138_v0  ;;  %v135_v1 = vld [vmem:[%s184_s1 + $0x8] sm:$0xff]   ;;  %129 = vmatprep.mubr.msk.bf16.mxu0 %vm139_vm1, %v138_v0  ;;  %20 = vst.msk [vmem:[#allocation2] sm:$0xff] %vm19_vm0, %v138_v0  ;;  %21 = vst.msk [vmem:[#allocation2 + $0x8] sm:$0xff] %vm19_vm0, %v138_v0  ;;  %v136_v2 = vld [vmem:[%s184_s1] sm:$0xff]  }
   0x2   :  { %126 = vmatpush3.bf16.msra.mxu0 %v135_v1  ;;  %v137_v3 = vld [vmem:[%s185_s0] sm:$0xff]  }
   0x3   :  { %127 = vmatprep.subr.bf16.mxu0 %v138_v0  ;;  %v121_v12 = vld [vmem:[%s186_s2] ss:$0 sm:$0xff] }
   0x6   :  { %128 = vmatpush3.bf16.msra.mxu0 %v136_v2 }
   0x8   :  { %v22_v4 = vld [vmem:[#allocation2] sm:$0xff]  ;;  %v23_v8 = vld [vmem:[#allocation2 + $0x8] sm:$0xff] }
   0x9   :  { %130 = vmatmul.mubr.msk.bf16.vlgmr.msra.gmra.mxu0 %vm47_vm2, %v137_v3 }
  0xc9   :  { %v85_v5 = vpop.f32.mrf.mxu0 }
  0xca   :  { %v92_v6 = vadd.f32 %v85_v5, %v22_v4 }
  0xcb   :  { %v131_v7 = vpop.f32.mrf.mxu0 }
  0xcc   :  { %95 = vst.msk [vmem:[#allocation2] sm:$0xff] %vm19_vm0, %v92_v6 }
  0xcd   :  { %v88_v9 = vpop.f32.mrf.mxu0 }
  0xce   :  { %v93_v10 = vadd.f32 %v88_v9, %v23_v8 }
  0xcf   :  { %v132_v11 = vpop.f32.mrf.mxu0 }
  0xd0   :  { %96 = vst.msk [vmem:[#allocation2 + $0x8] sm:$0xff] %vm19_vm0, %v93_v10 }
  0xd3   :  { %v100_v13 = vld [vmem:[#allocation2] sm:$0xff] }
  0xd4   :  { %v109_v14 = vadd.f32 %v121_v12, %v100_v13 }
  0xd6   :  { %111 = vst.msk [vmem:[%s187_s3] sm:$0xff] %vm19_vm0, %v109_v14 }
  0xd7   :  { %v101_v15 = vld [vmem:[#allocation2 + $0x8] sm:$0xff] }
  0xd8   :  { %v110_v16 = vadd.f32 %v121_v12, %v101_v15 }
  0xda   :  { %112 = vst.msk [vmem:[%s187_s3 + $0x8] sm:$0xff] %vm19_vm0, %v110_v16 }

// kernel: causal_self_attention.4
= control target key start
LH: loop header
LB: loop body
LE: loop exit
PB: predicated region body
PF: predicated region fallthrough
CT: control target
= control target key end

     0   :  { %s806_s12 = smov 0   ;;  %s808_s13 = smov 0   ;;  %s921_s0 = inlined_call_operand.vmem [shape: bf16[2,4,8,8], index: 0, kind: input, shape index: {}]   ;;  %s922_s1 = inlined_call_operand.vmem [shape: bf16[2,4,8,8], index: 1, kind: input, shape index: {}]   ;;  %s923_s2 = inlined_call_operand.vmem [shape: bf16[2,4,8,8], index: 2, kind: input, shape index: {}]   ;;  %s924_s3 = inlined_call_operand.vmem [shape: f32[2,4,8,8], index: 3, kind: output, shape index: {}]  }
   0x1   :  { %s810_s14 = smov 0   ;;  %s812_s15 = smov 0  }
   0x2   :  { %s814_s16 = smov 0  }
   0x3 LB: > { %s28_s17 = sadd.s32 1, %s758_s14  ;;  %s32_s18 = sadd.s32 1, %s762_s15  ;;  %s766_s16 = sphi %s814_s16, %s13_s16   ;;  %s762_s15 = sphi %s812_s15, %s931_s15   ;;  %s758_s14 = sphi %s810_s14, %s930_s14   ;;  %s754_s13 = sphi %s808_s13, %s929_s13   ;;  %s750_s12 = sphi %s806_s12, %s928_s12  }
   0x4   : > { %p30_p0 = scmp.ge.s32.totalorder %s28_s17, 4  ;;  %p600_p1 = scmp.ge.s32.totalorder %s766_s16, 1 }
   0x5   : > { %p200_p2 = scmp.lt.s32.totalorder %s766_s16, 9 }
   0x6   : > { %s933_s17 = smov (%p30_p0, %s28_s17), 0  ;;  %s935_s18 = smov (!%p30_p0, %s32_s18), %s762_s15 }
   0x7   : > { %p201_p3 = pnand %p600_p1, %p200_p2  ;;  %p34_p4 = scmp.ge.s32.totalorder %s935_s18, 2 }
   0x8   : > { %p252_p5 = scmp.lt.s32.totalorder (!%p201_p3), %s754_s13, 1  ;;  %p254_p6 = scmp.lt.s32.totalorder (!%p201_p3), %s750_s12, 3 }
   0x9   : > { %s937_s18 = smov (%p34_p4, %s935_s18), 0  ;;  %204 = sbr.rel (%p201_p3) target bundleno = 588 (0x24c), region = 32 }
   0xa   : > { %s867_s8 = smov (!%p201_p3), 0  }
   0xe   : > { %v294_v0 = vlaneseq  ;;  %s939_s13 = smov (!%p252_p5, %s754_s13), 1  ;;  %s941_s12 = smov (!%p254_p6, %s750_s12), 3  ;;  %v861_v4 = vmov 0.0   ;;  %v863_v5 = vmov 0.0   ;;  %v865_v6 = vmov -1e+30  }
   0xf   : > { %s601_s19 = sshll.u32 %s939_s13, 2 }
  0x10   : > { %v837_v1 = vshrl.u32 %v294_v0, 7  ;;  %s260_s20 = sadd.s32 %s601_s19, %s941_s12 }
  0x11   : > { %s839_s21 = sshll.u32 %s260_s20, 2  ;;  %s608_s22 = sshll.u32 %s260_s20, 3 }
  0x12   : > { %s262_s25 = scalar_lea.vmem %s921_s0, %s839_s21  ;;  %s270_s28 = scalar_lea.vmem %s922_s1, %s839_s21 }
  0x13   : > { %s278_s4 = scalar_lea.vmem %s923_s2, %s839_s21  ;;  %s856_s7 = scalar_lea.vmem %s924_s3, %s608_s22  ;;  %v858_v2 = vld [vmem:[%s262_s25] sm:$0xf] }
  0x14   : > { %v293_v3 = vmul.bf16 1052065461, %v858_v2 }
  0x15 LB: >> { %v784_v7 = vmov 0.0   ;;  %vm785_vm0 = vmmov 0   ;;  %s609_s9 = sshll.u32 %s782_s8, 3  ;;  %vm318_vm1 = vcmask 64512   ;;  %v366_v10 = vand.u32 127, %v294_v0  ;;  %s303_s8 = sadd.s32 1, %s782_s8   ;;  %s782_s8 = sphi %s867_s8, %s303_s8   ;;  %v778_v6 = vphi %v865_v6, %v927_v6   ;;  %v774_v5 = vphi %v863_v5, %v926_v5   ;;  %v770_v4 = vphi %v861_v4, %v925_v4  }
  0x16   : >> { %620 = vmatprep.subr.bf16.mxu0 %v784_v7  ;;  %622 = vmatprep.mubr.msk.bf16.mxu0 %vm785_vm0, %v784_v7  ;;  %s310_s10 = sshra.s32 %s609_s9, 3  ;;  %v367_v11 = vstv %s609_s9  ;;  %vm391_vm3 = vcmask 1043456   ;;  %p302_p7 = scmp.ge.s32.totalorder %s303_s8, 1 }
  0x17   : >> { %626 = vmatprep.subr.bf16.mxu1 %v784_v7  ;;  %628 = vmatprep.mubr.msk.bf16.mxu1 %vm785_vm0, %v784_v7  ;;  %s610_s11 = sshll.u32 %s310_s10, 2  ;;  %v368_v12 = vadd.s32 %v367_v11, %v366_v10 }
  0x18   : >> { %s313_s19 = scalar_lea.vmem %s270_s28, %s610_s11  ;;  %s316_s23 = scalar_lea.vmem %s278_s4, %s610_s11 }
  0x19   : >> { %v314_v8 = vld [vmem:[%s313_s19] sm:$0xf]  ;;  %vm369_vm2 = vcmp.ge.s32.totalorder %v837_v1, %v368_v12 }
  0x1a   : >> { %v323_v9 = vsel %vm318_vm1, %v314_v8, 0  ;;  %v317_v19 = vld [vmem:[%s316_s23] sm:$0xf] }
  0x1b   : >> { %621 = vmatpush3.bf16.xpose.msra.mxu0 %v323_v9  ;;  %v393_v20 = vsel %vm391_vm3, %v317_v19, 0 }
  0x1c   : >> { %627 = vmatpush3.bf16.msra.mxu1 %v393_v20 }
  0x22   : >> { %623 = vmatmul.mubr.msk.bf16.vlgmr.msra.gmra.mxu0 %vm318_vm1, %v293_v3 }
  0xe2   : >> { %v359_v13 = vpop.f32.mrf.mxu0 }
  0xe3   : >> { %v370_v14 = vsel %vm369_vm2, %v359_v13, -1e+30 }
  0xe4   : >> { %v624_v15 = vpop.f32.mrf.mxu0  ;;  %v371_v16 = vsel %vm318_vm1, %v370_v14, -inf }
  0xe5   : >> { %372 = vmax.xlane.f32.xlu0 %v371_v16 }
  0xe6   : >> { %v362_v17 = vpop.f32.mrf.mxu0 }
  0xe8   : >> { %v625_v18 = vpop.f32.mrf.mxu0 }
 0x16e   : >> { %v373_v21 = vpop.xlane.xlu0 %372 }
 0x16f   : >> { %v374_v22 = vmax.f32 %v778_v6, %v373_v21  }
 0x171   : >> { %v375_v23 = vsub.f32 %v778_v6, %v374_v22  ;;  %v378_v24 = vsub.f32 %v370_v14, %v374_v22  ;;  %v927_v6 = vmov %v374_v22 }
 0x173   : >> { %v379_v25 = vmul.f32 1.442695, %v378_v24  ;;  %v376_v29 = vmul.f32 1.442695, %v375_v23 }
 0x175   : >> { %706 = vpow2.f32 %v379_v25 }
 0x176   : >> { %708 = vpow2.f32 %v376_v29 }
 0x182   : >> { %v707_v26 = vpop.eup %706 }
 0x183   : >> { %v382_v27 = vsel %vm318_vm1, %v707_v26, 0.0  ;;  %v387_v28 = vpack.c.bf16 %v707_v26, %v707_v26  ;;  %v709_v30 = vpop.eup %708 }
 0x184   : >> { %383 = vadd.xlane.f32.xlu0 %v382_v27  ;;  %v381_v31 = vmul.f32 %v774_v5, %v709_v30  ;;  %v386_v34 = vmul.f32 %v770_v4, %v709_v30 }
 0x185   : >> { %629 = vmatmul.mubr.msk.bf16.vlgmr.msra.gmra.mxu1 %vm318_vm1, %v387_v28 }
 0x20d   : >> { %v384_v32 = vpop.xlane.xlu0 %383 }
 0x20e   : >> { %v385_v33 = vadd.f32 %v384_v32, %v381_v31  }
 0x210   : >> { %v926_v5 = vmov %v385_v33  ;;  %710 = vrcp.f32 (%p302_p7), %v385_v33 }
 0x21d   : > { %v711_v40 = vpop.eup (%p302_p7), %710 }
 0x245   : >> { %v429_v35 = vpop.f32.mrf.mxu1 }
 0x246   : >> { %v435_v36 = vadd.f32 %v429_v35, %v386_v34  }
 0x247   : >> { %v630_v37 = vpop.f32.mrf.mxu1  ;;  %305 = sbr.rel (!%p302_p7) target bundleno = 21 (0x15), region = 77 }
 0x248   : >> { %v925_v4 = vmov %v435_v36  ;;  %v437_v41 = vmul.f32 (%p302_p7), %v711_v40, %v435_v36 }
 0x249   : >> { %v432_v38 = vpop.f32.mrf.mxu1 }
 0x24a   : > { %439 = vst.msk [vmem:[%s856_s7] sm:$0xff] (%p302_p7), %vm318_vm1, %v437_v41 }
 0x24b   : >> { %v631_v39 = vpop.f32.mrf.mxu1 }
 0x24c PF: > { %s13_s16 = sadd.s32 1, %s766_s16   ;;  %s928_s12 = smov %s758_s14 }
 0x24d   : > { %p10_p8 = scmp.ge.s32.totalorder %s13_s16, 10   ;;  %s929_s13 = smov %s762_s15 }
 0x24e   : > { %s930_s14 = smov %s933_s17  ;;  %s931_s15 = smov %s937_s18 }
 0x24f   :  { %12 = sbr.rel (!%p10_p8) target bundleno = 3 (0x3), region = 88 }

// kernel: causal_self_attention.5
= control target key start
LH: loop header
LB: loop body
LE: loop exit
PB: predicated region body
PF: predicated region fallthrough
CT: control target
= control target key end

     0   :  { %v175_v1 = vmov 0.0   ;;  %vm176_vm0 = vmmov 0   ;;  %vm20_vm1 = vcmask 261120   ;;  %s222_s0 = inlined_call_operand.vmem [shape: bf16[16,32], index: 0, kind: input, shape index: {}]   ;;  %s223_s1 = inlined_call_operand.vmem [shape: bf16[32,32], index: 1, kind: input, shape index: {}]   ;;  %s224_s2 = inlined_call_operand.vmem [shape: f32[1,32], index: 2, kind: input, shape index: {}]   ;;  %s225_s3 = inlined_call_operand.hbm [shape: f32[16,32], index: 3, kind: output, shape index: {}]  }
   0x1   :  { %v150_v0 = vld [vmem:[%s223_s1 + $0x8] sm:$0xff]   ;;  %137 = vmatprep.subr.bf16.mxu0 %v175_v1  ;;  %v151_v2 = vld [vmem:[%s223_s1] sm:$0xff]   ;;  %141 = vmatprep.mubr.msk.bf16.mxu0 %vm176_vm0, %v175_v1  ;;  %21 = vst.msk [vmem:[#allocation2] sm:$0xff] %vm20_vm1, %v175_v1  ;;  %22 = vst.msk [vmem:[#allocation2 + $0x8] sm:$0xff] %vm20_vm1, %v175_v1 }
   0x2   :  { %138 = vmatpush3.bf16.msra.mxu0 %v150_v0 }
   0x3   :  { %139 = vmatprep.subr.bf16.mxu0 %v175_v1 }
   0x4   :  { %8 = vsyncpa [#allocation4], 0  ;;  %v152_v3 = vld [vmem:[%s222_s0] sm:$0xff]   ;;  %s177_s0 = smov [#allocation3]  }
   0x5   :  { %v133_v12 = vld [vmem:[%s224_s2] ss:$0 sm:$0xff]  ;;  %s118_s19 = sshll.u32 %s177_s0, 4  ;;  %s119_s19 = int_to_ptr.vmem [resolvable:$true] %s118_s19 }
   0x6   :  { %140 = vmatpush3.bf16.msra.mxu0 %v151_v2  ;;  %s153_s20 = scalar_lea.vmem %s119_s19, 256  ;;  %p158_p1 = scmp.lt.s32.totalorder %s119_s19, %s119_s19 }
   0x7   :  { %p154_p0 = scmp.ne.s32.totalorder %s119_s19, %s153_s20  ;;  %p159_p2 = scmp.lt.s32.totalorder %s153_s20, %s153_s20 }
   0x8   :  { %v23_v4 = vld [vmem:[#allocation2] sm:$0xff]  ;;  %v24_v8 = vld [vmem:[#allocation2 + $0x8] sm:$0xff] }
   0x9   :  { %142 = vmatmul.mubr.msk.bf16.vlgmr.msra.gmra.mxu0 %vm20_vm1, %v152_v3  ;;  %p160_p3 = por %p159_p2, %p158_p1 }
   0xb   :  { %p161_p4 = pnand %p160_p3, %p154_p0 }
  0xc9   :  { %v86_v5 = vpop.f32.mrf.mxu0 }
  0xca   :  { %v93_v6 = vadd.f32 %v86_v5, %v23_v4 }
  0xcb   :  { %v143_v7 = vpop.f32.mrf.mxu0 }
  0xcc   :  { %95 = vst.msk [vmem:[#allocation2] sm:$0xff] %vm20_vm1, %v93_v6 }
  0xcd   :  { %v89_v9 = vpop.f32.mrf.mxu0 }
  0xce   :  { %v94_v10 = vadd.f32 %v89_v9, %v24_v8 }
  0xcf   :  { %v144_v11 = vpop.f32.mrf.mxu0 }
  0xd0   :  { %96 = vst.msk [vmem:[#allocation2 + $0x8] sm:$0xff] %vm20_vm1, %v94_v10 }
  0xd3   :  { %v100_v13 = vld [vmem:[#allocation2] sm:$0xff] }
  0xd4   :  { %v109_v14 = vadd.f32 %v133_v12, %v100_v13 }
  0xd6   :  { %111 = vst.msk [vmem:[#allocation3] sm:$0xff] %vm20_vm1, %v109_v14 }
  0xd7   :  { %v101_v15 = vld [vmem:[#allocation2 + $0x8] sm:$0xff] }
  0xd8   :  { %v110_v16 = vadd.f32 %v133_v12, %v101_v15 }
  0xda   :  { %112 = vst.msk [vmem:[#allocation3 + $0x8] sm:$0xff] %vm20_vm1, %v110_v16 }
  0xdb   :  { %164 = shalt.err (!%p161_p4)
}
  0xdc   :  { %s178_s21 = smov 128   ;;  %s179_s2 = smov 8  }
  0xdd   :  { %124 = dma.vmem_to_hbm [thread:$0]  %s119_s19, 256, %s225_s3, [#allocation4], %s178_s21, %s178_s21, %s179_s2  }
  0xde   :  { %173 = dma.done.wait [#allocation4], 256  }
  0xdf   :  { %174 = vsyncadd [#allocation4], 4294967040 }
  0xe0   :  { %128 = vsyncpa [#allocation4], 1 }

</bundles_post_ra>
